<compile_context>
chip_gen: v7x
topology: tpu7x:2x2x1
jax: 0.10.0
libtpu: 0.0.40
codegen_flags: <defaults>
</compile_context>

<pallas_src>
import jax
import jax.numpy as jnp
from jax.experimental import pallas as pl
from jax.experimental.pallas import tpu as pltpu  # noqa: F401  (TPU backend assumed)

# Logical module sizes (synthetic stand-in encoder).
B, S, H, F, VOCAB = 2, 8, 32, 64, 100
NT = B * S                      # 16 token rows, processed as one batched LHS
LANE = 128                      # vreg lane width
VOCAB_PAD = 128                 # vocab rows padded to one lane-tile for the one-hot gather

# --- matrix-slab row offsets (bf16, width 128) ---
EMB_OFF = 0                     # rows   0:128  embedding table      (cols 0:H)
WO_OFF = 128                    # rows 128:160  attention out proj   (cols 0:H)
W1_OFF = 160                    # rows 160:192  FFN in               (cols 0:F)
W2_OFF = 192                    # rows 192:256  FFN out              (cols 0:H)
WSLAB_ROWS = 256

# --- vector-slab row offsets (f32, width 128) ---
BQ, BK, BV, BO = 0, 1, 2, 3     # projection biases (cols 0:H)
G1, BE1 = 4, 5                  # LayerNorm 1 gamma / beta
B1R, B2R = 6, 7                 # FFN biases (cols 0:F / 0:H)
G2, BE2 = 8, 9                  # LayerNorm 2 gamma / beta
POS_OFF = 16                    # rows 16:32  positional embeddings tiled to NT rows
POOL_OFF = 32                   # rows 32:34  pre-normalized mean-pool weights (B, NT)
ABIAS_OFF = 40                  # rows 40:56  additive attention bias (NT, NT)
VSLAB_ROWS = 56


# ---------------------------------------------------------------------------
# Fused kernel: embedding + encoder layer + masked mean pooling + L2 normalize.
# ---------------------------------------------------------------------------
def fused_sentence_kernel(ids_ref, wqkv_ref, wslab_ref, vslab_ref, out_ref):
    ids = ids_ref[...]                                               # (NT, 1) int32
    V = vslab_ref[...]                                               # (VSLAB_ROWS, 128) f32

    # --- embedding gather as one-hot matmul + positional add (in-kernel) ---
    iota = jax.lax.broadcasted_iota(jnp.int32, (NT, VOCAB_PAD), 1)
    onehot = jnp.where(iota == ids, 1.0, 0.0).astype(jnp.bfloat16)   # (NT, 128)
    emb = wslab_ref[EMB_OFF:EMB_OFF + VOCAB_PAD, 0:H]                # (128, H) bf16
    x = jnp.dot(onehot, emb, preferred_element_type=jnp.float32)     # (NT, H) f32
    x = x + V[POS_OFF:POS_OFF + NT, 0:H]

    # --- fused QKV projection (one matmul; 1/sqrt(H) folded into the q block) ---
    qkv = jnp.dot(x.astype(jnp.bfloat16), wqkv_ref[...],
                  preferred_element_type=jnp.float32)                # (NT, 384)
    q = qkv[:, 0:H] + V[BQ:BQ + 1, 0:H]
    k = qkv[:, LANE:LANE + H] + V[BK:BK + 1, 0:H]
    v = qkv[:, 2 * LANE:2 * LANE + H] + V[BV:BV + 1, 0:H]

    # --- block-diagonal single-head attention (masks folded into additive bias) ---
    s = jnp.einsum('qd,kd->qk', q.astype(jnp.bfloat16), k.astype(jnp.bfloat16),
                   preferred_element_type=jnp.float32)               # (NT, NT)
    s = s + V[ABIAS_OFF:ABIAS_OFF + NT, 0:NT]
    s = s - jnp.max(s, axis=-1, keepdims=True)
    p = jnp.exp(s)
    att = p / jnp.sum(p, axis=-1, keepdims=True)                     # exact softmax (f32)
    ctx = jnp.dot(att.astype(jnp.bfloat16), v.astype(jnp.bfloat16),
                  preferred_element_type=jnp.float32)                # (NT, H)
    attn_out = jnp.dot(ctx.astype(jnp.bfloat16),
                       wslab_ref[WO_OFF:WO_OFF + H, 0:H],
                       preferred_element_type=jnp.float32) + V[BO:BO + 1, 0:H]

    # --- residual + LayerNorm 1 (exact over the H logical lanes; no padding present) ---
    h = x + attn_out
    mu = jnp.mean(h, axis=-1, keepdims=True)
    hc = h - mu
    var = jnp.mean(hc * hc, axis=-1, keepdims=True)
    h1 = hc * jax.lax.rsqrt(var + 1e-5) * V[G1:G1 + 1, 0:H] + V[BE1:BE1 + 1, 0:H]

    # --- feed-forward (tanh-approx GELU; see TODO at top) ---
    ff = jnp.dot(h1.astype(jnp.bfloat16), wslab_ref[W1_OFF:W1_OFF + H, 0:F],
                 preferred_element_type=jnp.float32) + V[B1R:B1R + 1, 0:F]
    ff = jax.nn.gelu(ff)
    ffo = jnp.dot(ff.astype(jnp.bfloat16), wslab_ref[W2_OFF:W2_OFF + F, 0:H],
                  preferred_element_type=jnp.float32) + V[B2R:B2R + 1, 0:H]

    # --- residual + LayerNorm 2 ---
    h2 = h1 + ffo
    mu2 = jnp.mean(h2, axis=-1, keepdims=True)
    hc2 = h2 - mu2
    var2 = jnp.mean(hc2 * hc2, axis=-1, keepdims=True)
    tok = hc2 * jax.lax.rsqrt(var2 + 1e-5) * V[G2:G2 + 1, 0:H] + V[BE2:BE2 + 1, 0:H]

    # --- masked mean pooling (pre-normalized weights, module's clamp folded on host) ---
    pooled = jnp.dot(V[POOL_OFF:POOL_OFF + B, 0:NT], tok,
                     preferred_element_type=jnp.float32)             # (B, H)
    # --- exact L2 normalize (F.normalize(p=2, dim=1)) ---
    nrm = jnp.sqrt(jnp.sum(pooled * pooled, axis=-1, keepdims=True))
    out_ref[...] = pooled / jnp.maximum(nrm, 1e-12)


def fused_forward(ids, wqkv, wslab, vslab):
    # Grid-free call: whole arrays resident in VMEM (<0.2 MiB total), weights DMA'd once,
    # 4 input DMAs + 1 output DMA per call.
    return pl.pallas_call(
        fused_sentence_kernel,
        out_shape=jax.ShapeDtypeStruct((B, H), jnp.float32),
    )(ids, wqkv, wslab, vslab)


# ---------------------------------------------------------------------------
# Deterministic parameter construction, packed into slabs on the host.
# ---------------------------------------------------------------------------
def make_params(key):
    ks = jax.random.split(key, 14)
    scale = 0.02
    wq = jax.random.normal(ks[0], (H, H), jnp.float32) * scale
    wk = jax.random.normal(ks[1], (H, H), jnp.float32) * scale
    wv = jax.random.normal(ks[2], (H, H), jnp.float32) * scale
    wo = jax.random.normal(ks[3], (H, H), jnp.float32) * scale
    w1 = jax.random.normal(ks[4], (H, F), jnp.float32) * scale
    w2 = jax.random.normal(ks[5], (F, H), jnp.float32) * scale
    emb = jax.random.normal(ks[6], (VOCAB, H), jnp.float32) * scale
    pos = jax.random.normal(ks[7], (S, H), jnp.float32) * scale
    bq = jax.random.normal(ks[8], (H,), jnp.float32) * 0.01
    bk = jax.random.normal(ks[9], (H,), jnp.float32) * 0.01
    bv = jax.random.normal(ks[10], (H,), jnp.float32) * 0.01
    bo = jax.random.normal(ks[11], (H,), jnp.float32) * 0.01
    b1 = jax.random.normal(ks[12], (F,), jnp.float32) * 0.01
    b2 = jax.random.normal(ks[13], (H,), jnp.float32) * 0.01
    g1 = jnp.ones((H,), jnp.float32)
    be1 = jnp.zeros((H,), jnp.float32)
    g2 = jnp.ones((H,), jnp.float32)
    be2 = jnp.zeros((H,), jnp.float32)

    # Fold the attention scale 1/sqrt(H) into wq / bq on the host.
    inv_sqrt_h = 1.0 / (H ** 0.5)
    wq = wq * inv_sqrt_h
    bq = bq * inv_sqrt_h

    # Fused QKV weight: each projection sits in the first H columns of its 128-lane block
    # so in-kernel slices start at 128-aligned lane offsets.
    wqkv = jnp.zeros((H, 3 * LANE), jnp.float32)
    wqkv = wqkv.at[:, 0:H].set(wq)
    wqkv = wqkv.at[:, LANE:LANE + H].set(wk)
    wqkv = wqkv.at[:, 2 * LANE:2 * LANE + H].set(wv)
    wqkv = wqkv.astype(jnp.bfloat16)

    # Matrix slab (bf16, width 128): embedding table + wo + w1 + w2 at logical K widths.
    wslab = jnp.zeros((WSLAB_ROWS, LANE), jnp.float32)
    wslab = wslab.at[EMB_OFF:EMB_OFF + VOCAB, 0:H].set(emb)
    wslab = wslab.at[WO_OFF:WO_OFF + H, 0:H].set(wo)
    wslab = wslab.at[W1_OFF:W1_OFF + H, 0:F].set(w1)
    wslab = wslab.at[W2_OFF:W2_OFF + F, 0:H].set(w2)
    wslab = wslab.astype(jnp.bfloat16)

    # Static part of the vector slab (f32): biases, LN params, tiled positional embeddings.
    vparam = jnp.zeros((POOL_OFF, LANE), jnp.float32)
    vparam = vparam.at[BQ, 0:H].set(bq)
    vparam = vparam.at[BK, 0:H].set(bk)
    vparam = vparam.at[BV, 0:H].set(bv)
    vparam = vparam.at[BO, 0:H].set(bo)
    vparam = vparam.at[G1, 0:H].set(g1)
    vparam = vparam.at[BE1, 0:H].set(be1)
    vparam = vparam.at[B1R, 0:F].set(b1)
    vparam = vparam.at[B2R, 0:H].set(b2)
    vparam = vparam.at[G2, 0:H].set(g2)
    vparam = vparam.at[BE2, 0:H].set(be2)
    vparam = vparam.at[POS_OFF:POS_OFF + NT, 0:H].set(jnp.tile(pos, (B, 1)))
    return wqkv, wslab, vparam


def sentence_transformer_forward(token_ids, attn_mask, params):
    wqkv, wslab, vparam = params
    m = attn_mask.astype(jnp.float32)                                # (B, S)
    m_flat = m.reshape(NT)
    batch_of = jnp.arange(NT) // S

    # Mean-pooling weights (block form, module's clamp(min=1e-9) divide folded in).
    sel = (batch_of[None, :] == jnp.arange(B)[:, None]).astype(jnp.float32)   # (B, NT)
    counts = jnp.maximum(jnp.sum(m, axis=1, keepdims=True), 1e-9)
    pool_w = sel * m_flat[None, :] / counts                                    # (B, NT)

    # Additive attention bias: block-diagonal across the batch + key padding mask.
    same_batch = batch_of[:, None] == batch_of[None, :]
    key_ok = m_flat[None, :] > 0.5
    abias = jnp.where(same_batch & key_ok, 0.0, -1e9).astype(jnp.float32)      # (NT, NT)

    # Dynamic part of the vector slab, concatenated onto the static parameter block.
    vdyn = jnp.zeros((VSLAB_ROWS - POOL_OFF, LANE), jnp.float32)
    vdyn = vdyn.at[0:B, 0:NT].set(pool_w)
    vdyn = vdyn.at[ABIAS_OFF - POOL_OFF:ABIAS_OFF - POOL_OFF + NT, 0:NT].set(abias)
    vslab = jnp.concatenate([vparam, vdyn], axis=0)                            # (56, 128)

    ids = token_ids.reshape(NT, 1).astype(jnp.int32)
    return fused_forward(ids, wqkv, wslab, vslab)                              # (B, H)


if __name__ == "__main__":
    key = jax.random.PRNGKey(0)
    k_tok, k_par = jax.random.split(key)

    # deterministic "tokenized" input: ids + padding mask (lengths 8 and 5)
    token_ids = jax.random.randint(k_tok, (B, S), 0, VOCAB, dtype=jnp.int32)
    lengths = jnp.array([8, 5], dtype=jnp.int32)
    attn_mask = (jnp.arange(S)[None, :] < lengths[:, None]).astype(jnp.int32)
    token_ids = token_ids * attn_mask  # pad token id = 0

    params = make_params(k_par)
    out = sentence_transformer_forward(token_ids, attn_mask, params)
    out = jax.block_until_ready(out)

    assert out.shape == (B, H)
    # rows are unit-norm after F.normalize
    norms = jnp.linalg.norm(out, axis=1)
    assert bool(jnp.all(jnp.abs(norms - 1.0) < 1e-4))
    print("KERNEL_OK")
</pallas_src>

<mosaic_0001>
module attributes {stable_mosaic.version = 11 : i64} {
  func.func @fused_sentence_kernel(%arg0: memref<16x1xi32, #tpu.memory_space<vmem>>, %arg1: memref<32x384xbf16, #tpu.memory_space<vmem>>, %arg2: memref<256x128xbf16, #tpu.memory_space<vmem>>, %arg3: memref<56x128xf32, #tpu.memory_space<vmem>>, %arg4: memref<2x32xf32, #tpu.memory_space<vmem>>) attributes {dimension_semantics = [], scalar_prefetch = 0 : i64, scratch_operands = 0 : i64, tpu.core_type = #tpu.core_type<tc>} {
    %c0 = arith.constant 0 : index
    %c0_0 = arith.constant 0 : index
    %0 = vector.load %arg0[%c0, %c0_0] : memref<16x1xi32, #tpu.memory_space<vmem>>, vector<16x1xi32>
    %c0_1 = arith.constant 0 : index
    %c0_2 = arith.constant 0 : index
    %1 = vector.load %arg3[%c0_1, %c0_2] : memref<56x128xf32, #tpu.memory_space<vmem>>, vector<56x128xf32>
    %2 = tpu.iota {dimensions = array<i32: 1>} : vector<16x128xi32>
    %3 = vector.broadcast %0 : vector<16x1xi32> to vector<16x128xi32>
    %4 = arith.cmpi eq, %2, %3 : vector<16x128xi32>
    %cst = arith.constant 1.000000e+00 : f32
    %cst_3 = arith.constant 0.000000e+00 : f32
    %5 = vector.broadcast %cst : f32 to vector<16x128xf32>
    %6 = vector.broadcast %cst_3 : f32 to vector<16x128xf32>
    %7 = arith.select %4, %5, %6 : vector<16x128xi1>, vector<16x128xf32>
    %8 = arith.truncf %7 : vector<16x128xf32> to vector<16x128xbf16>
    %c0_4 = arith.constant 0 : index
    %c0_5 = arith.constant 0 : index
    %9 = vector.load %arg2[%c0_4, %c0_5] : memref<256x128xbf16, #tpu.memory_space<vmem>>, vector<128x32xbf16>
    %cst_6 = arith.constant dense<0.000000e+00> : vector<16x32xf32>
    %10 = tpu.matmul %8, %9, %cst_6 {dimension_numbers = #tpu.dot_dimension_numbers<[1], [0], [0], [1], [0, 0, 1, 1], [], []>} : vector<16x128xbf16>, vector<128x32xbf16>, vector<16x32xf32> -> vector<16x32xf32>
    %11 = vector.extract_strided_slice %1 {offsets = [16, 0], sizes = [16, 32], strides = [1, 1]} : vector<56x128xf32> to vector<16x32xf32>
    %12 = arith.addf %10, %11 : vector<16x32xf32>
    %13 = arith.truncf %12 : vector<16x32xf32> to vector<16x32xbf16>
    %c0_7 = arith.constant 0 : index
    %c0_8 = arith.constant 0 : index
    %14 = vector.load %arg1[%c0_7, %c0_8] : memref<32x384xbf16, #tpu.memory_space<vmem>>, vector<32x384xbf16>
    %cst_9 = arith.constant dense<0.000000e+00> : vector<16x384xf32>
    %15 = tpu.matmul %13, %14, %cst_9 {dimension_numbers = #tpu.dot_dimension_numbers<[1], [0], [0], [1], [0, 0, 1, 1], [], []>} : vector<16x32xbf16>, vector<32x384xbf16>, vector<16x384xf32> -> vector<16x384xf32>
    %16 = vector.extract_strided_slice %15 {offsets = [0, 0], sizes = [16, 32], strides = [1, 1]} : vector<16x384xf32> to vector<16x32xf32>
    %17 = vector.extract_strided_slice %1 {offsets = [0, 0], sizes = [1, 32], strides = [1, 1]} : vector<56x128xf32> to vector<1x32xf32>
    %18 = vector.broadcast %17 : vector<1x32xf32> to vector<16x32xf32>
    %19 = arith.addf %16, %18 : vector<16x32xf32>
    %20 = vector.extract_strided_slice %15 {offsets = [0, 128], sizes = [16, 32], strides = [1, 1]} : vector<16x384xf32> to vector<16x32xf32>
    %21 = vector.extract_strided_slice %1 {offsets = [1, 0], sizes = [1, 32], strides = [1, 1]} : vector<56x128xf32> to vector<1x32xf32>
    %22 = vector.broadcast %21 : vector<1x32xf32> to vector<16x32xf32>
    %23 = arith.addf %20, %22 : vector<16x32xf32>
    %24 = vector.extract_strided_slice %15 {offsets = [0, 256], sizes = [16, 32], strides = [1, 1]} : vector<16x384xf32> to vector<16x32xf32>
    %25 = vector.extract_strided_slice %1 {offsets = [2, 0], sizes = [1, 32], strides = [1, 1]} : vector<56x128xf32> to vector<1x32xf32>
    %26 = vector.broadcast %25 : vector<1x32xf32> to vector<16x32xf32>
    %27 = arith.addf %24, %26 : vector<16x32xf32>
    %28 = arith.truncf %19 : vector<16x32xf32> to vector<16x32xbf16>
    %29 = arith.truncf %23 : vector<16x32xf32> to vector<16x32xbf16>
    "tpu.trace_start"() <{level = 10 : i32, message = "qd,kd->qk"}> : () -> ()
    %cst_10 = arith.constant dense<0.000000e+00> : vector<16x16xf32>
    %30 = tpu.matmul %28, %29, %cst_10 {dimension_numbers = #tpu.dot_dimension_numbers<[1], [1], [0], [0], [0, 0, 1, 0], [], []>} : vector<16x32xbf16>, vector<16x32xbf16>, vector<16x16xf32> -> vector<16x16xf32>
    "tpu.trace_stop"() : () -> ()
    %31 = vector.extract_strided_slice %1 {offsets = [40, 0], sizes = [16, 16], strides = [1, 1]} : vector<56x128xf32> to vector<16x16xf32>
    %32 = arith.addf %30, %31 : vector<16x16xf32>
    %cst_11 = arith.constant dense<0xFF800000> : vector<16xf32>
    %33 = vector.multi_reduction <maximumf>, %32, %cst_11 [1] : vector<16x16xf32> to vector<16xf32>
    %34 = vector.shape_cast %33 : vector<16xf32> to vector<16x1xf32>
    %35 = vector.broadcast %34 : vector<16x1xf32> to vector<16x16xf32>
    %36 = arith.subf %32, %35 : vector<16x16xf32>
    %37 = math.exp %36 : vector<16x16xf32>
    %cst_12 = arith.constant dense<0.000000e+00> : vector<16xf32>
    %38 = vector.multi_reduction <add>, %37, %cst_12 [1] : vector<16x16xf32> to vector<16xf32>
    %39 = vector.shape_cast %38 : vector<16xf32> to vector<16x1xf32>
    %40 = vector.broadcast %39 : vector<16x1xf32> to vector<16x16xf32>
    %41 = arith.divf %37, %40 : vector<16x16xf32>
    %42 = arith.truncf %41 : vector<16x16xf32> to vector<16x16xbf16>
    %43 = arith.truncf %27 : vector<16x32xf32> to vector<16x32xbf16>
    %cst_13 = arith.constant dense<0.000000e+00> : vector<16x32xf32>
    %44 = tpu.matmul %42, %43, %cst_13 {dimension_numbers = #tpu.dot_dimension_numbers<[1], [0], [0], [1], [0, 0, 1, 1], [], []>} : vector<16x16xbf16>, vector<16x32xbf16>, vector<16x32xf32> -> vector<16x32xf32>
    %45 = arith.truncf %44 : vector<16x32xf32> to vector<16x32xbf16>
    %c128 = arith.constant 128 : index
    %c0_14 = arith.constant 0 : index
    %46 = vector.load %arg2[%c128, %c0_14] : memref<256x128xbf16, #tpu.memory_space<vmem>>, vector<32x32xbf16>
    %cst_15 = arith.constant dense<0.000000e+00> : vector<16x32xf32>
    %47 = tpu.matmul %45, %46, %cst_15 {dimension_numbers = #tpu.dot_dimension_numbers<[1], [0], [0], [1], [0, 0, 1, 1], [], []>} : vector<16x32xbf16>, vector<32x32xbf16>, vector<16x32xf32> -> vector<16x32xf32>
    %48 = vector.extract_strided_slice %1 {offsets = [3, 0], sizes = [1, 32], strides = [1, 1]} : vector<56x128xf32> to vector<1x32xf32>
    %49 = vector.broadcast %48 : vector<1x32xf32> to vector<16x32xf32>
    %50 = arith.addf %47, %49 : vector<16x32xf32>
    %51 = arith.addf %12, %50 : vector<16x32xf32>
    %cst_16 = arith.constant dense<0.000000e+00> : vector<16xf32>
    %52 = vector.multi_reduction <add>, %51, %cst_16 [1] : vector<16x32xf32> to vector<16xf32>
    %53 = vector.shape_cast %52 : vector<16xf32> to vector<16x1xf32>
    %cst_17 = arith.constant 3.200000e+01 : f32
    %54 = vector.broadcast %cst_17 : f32 to vector<16x1xf32>
    %55 = arith.divf %53, %54 : vector<16x1xf32>
    %56 = vector.broadcast %55 : vector<16x1xf32> to vector<16x32xf32>
    %57 = arith.subf %51, %56 : vector<16x32xf32>
    %58 = arith.mulf %57, %57 : vector<16x32xf32>
    %cst_18 = arith.constant dense<0.000000e+00> : vector<16xf32>
    %59 = vector.multi_reduction <add>, %58, %cst_18 [1] : vector<16x32xf32> to vector<16xf32>
    %60 = vector.shape_cast %59 : vector<16xf32> to vector<16x1xf32>
    %cst_19 = arith.constant 3.200000e+01 : f32
    %61 = vector.broadcast %cst_19 : f32 to vector<16x1xf32>
    %62 = arith.divf %60, %61 : vector<16x1xf32>
    %cst_20 = arith.constant 9.99999974E-6 : f32
    %63 = vector.broadcast %cst_20 : f32 to vector<16x1xf32>
    %64 = arith.addf %62, %63 : vector<16x1xf32>
    %65 = math.rsqrt %64 : vector<16x1xf32>
    %66 = vector.broadcast %65 : vector<16x1xf32> to vector<16x32xf32>
    %67 = arith.mulf %57, %66 : vector<16x32xf32>
    %68 = vector.extract_strided_slice %1 {offsets = [4, 0], sizes = [1, 32], strides = [1, 1]} : vector<56x128xf32> to vector<1x32xf32>
    %69 = vector.broadcast %68 : vector<1x32xf32> to vector<16x32xf32>
    %70 = arith.mulf %67, %69 : vector<16x32xf32>
    %71 = vector.extract_strided_slice %1 {offsets = [5, 0], sizes = [1, 32], strides = [1, 1]} : vector<56x128xf32> to vector<1x32xf32>
    %72 = vector.broadcast %71 : vector<1x32xf32> to vector<16x32xf32>
    %73 = arith.addf %70, %72 : vector<16x32xf32>
    %74 = arith.truncf %73 : vector<16x32xf32> to vector<16x32xbf16>
    %c160 = arith.constant 160 : index
    %c0_21 = arith.constant 0 : index
    %75 = vector.load %arg2[%c160, %c0_21] : memref<256x128xbf16, #tpu.memory_space<vmem>>, vector<32x64xbf16>
    %cst_22 = arith.constant dense<0.000000e+00> : vector<16x64xf32>
    %76 = tpu.matmul %74, %75, %cst_22 {dimension_numbers = #tpu.dot_dimension_numbers<[1], [0], [0], [1], [0, 0, 1, 1], [], []>} : vector<16x32xbf16>, vector<32x64xbf16>, vector<16x64xf32> -> vector<16x64xf32>
    %77 = vector.extract_strided_slice %1 {offsets = [6, 0], sizes = [1, 64], strides = [1, 1]} : vector<56x128xf32> to vector<1x64xf32>
    %78 = vector.broadcast %77 : vector<1x64xf32> to vector<16x64xf32>
    %79 = arith.addf %76, %78 : vector<16x64xf32>
    %80 = arith.mulf %79, %79 : vector<16x64xf32>
    %81 = arith.mulf %79, %80 : vector<16x64xf32>
    %cst_23 = arith.constant 4.471500e-02 : f32
    %82 = vector.broadcast %cst_23 : f32 to vector<16x64xf32>
    %83 = arith.mulf %82, %81 : vector<16x64xf32>
    %84 = arith.addf %79, %83 : vector<16x64xf32>
    %cst_24 = arith.constant 0.797884583 : f32
    %85 = vector.broadcast %cst_24 : f32 to vector<16x64xf32>
    %86 = arith.mulf %85, %84 : vector<16x64xf32>
    %87 = math.tanh %86 : vector<16x64xf32>
    %cst_25 = arith.constant 1.000000e+00 : f32
    %88 = vector.broadcast %cst_25 : f32 to vector<16x64xf32>
    %89 = arith.addf %88, %87 : vector<16x64xf32>
    %cst_26 = arith.constant 5.000000e-01 : f32
    %90 = vector.broadcast %cst_26 : f32 to vector<16x64xf32>
    %91 = arith.mulf %90, %89 : vector<16x64xf32>
    %92 = arith.mulf %79, %91 : vector<16x64xf32>
    %93 = arith.truncf %92 : vector<16x64xf32> to vector<16x64xbf16>
    %c192 = arith.constant 192 : index
    %c0_27 = arith.constant 0 : index
    %94 = vector.load %arg2[%c192, %c0_27] : memref<256x128xbf16, #tpu.memory_space<vmem>>, vector<64x32xbf16>
    %cst_28 = arith.constant dense<0.000000e+00> : vector<16x32xf32>
    %95 = tpu.matmul %93, %94, %cst_28 {dimension_numbers = #tpu.dot_dimension_numbers<[1], [0], [0], [1], [0, 0, 1, 1], [], []>} : vector<16x64xbf16>, vector<64x32xbf16>, vector<16x32xf32> -> vector<16x32xf32>
    %96 = vector.extract_strided_slice %1 {offsets = [7, 0], sizes = [1, 32], strides = [1, 1]} : vector<56x128xf32> to vector<1x32xf32>
    %97 = vector.broadcast %96 : vector<1x32xf32> to vector<16x32xf32>
    %98 = arith.addf %95, %97 : vector<16x32xf32>
    %99 = arith.addf %73, %98 : vector<16x32xf32>
    %cst_29 = arith.constant dense<0.000000e+00> : vector<16xf32>
    %100 = vector.multi_reduction <add>, %99, %cst_29 [1] : vector<16x32xf32> to vector<16xf32>
    %101 = vector.shape_cast %100 : vector<16xf32> to vector<16x1xf32>
    %cst_30 = arith.constant 3.200000e+01 : f32
    %102 = vector.broadcast %cst_30 : f32 to vector<16x1xf32>
    %103 = arith.divf %101, %102 : vector<16x1xf32>
    %104 = vector.broadcast %103 : vector<16x1xf32> to vector<16x32xf32>
    %105 = arith.subf %99, %104 : vector<16x32xf32>
    %106 = arith.mulf %105, %105 : vector<16x32xf32>
    %cst_31 = arith.constant dense<0.000000e+00> : vector<16xf32>
    %107 = vector.multi_reduction <add>, %106, %cst_31 [1] : vector<16x32xf32> to vector<16xf32>
    %108 = vector.shape_cast %107 : vector<16xf32> to vector<16x1xf32>
    %cst_32 = arith.constant 3.200000e+01 : f32
    %109 = vector.broadcast %cst_32 : f32 to vector<16x1xf32>
    %110 = arith.divf %108, %109 : vector<16x1xf32>
    %cst_33 = arith.constant 9.99999974E-6 : f32
    %111 = vector.broadcast %cst_33 : f32 to vector<16x1xf32>
    %112 = arith.addf %110, %111 : vector<16x1xf32>
    %113 = math.rsqrt %112 : vector<16x1xf32>
    %114 = vector.broadcast %113 : vector<16x1xf32> to vector<16x32xf32>
    %115 = arith.mulf %105, %114 : vector<16x32xf32>
    %116 = vector.extract_strided_slice %1 {offsets = [8, 0], sizes = [1, 32], strides = [1, 1]} : vector<56x128xf32> to vector<1x32xf32>
    %117 = vector.broadcast %116 : vector<1x32xf32> to vector<16x32xf32>
    %118 = arith.mulf %115, %117 : vector<16x32xf32>
    %119 = vector.extract_strided_slice %1 {offsets = [9, 0], sizes = [1, 32], strides = [1, 1]} : vector<56x128xf32> to vector<1x32xf32>
    %120 = vector.broadcast %119 : vector<1x32xf32> to vector<16x32xf32>
    %121 = arith.addf %118, %120 : vector<16x32xf32>
    %122 = vector.extract_strided_slice %1 {offsets = [32, 0], sizes = [2, 16], strides = [1, 1]} : vector<56x128xf32> to vector<2x16xf32>
    %cst_34 = arith.constant dense<0.000000e+00> : vector<2x32xf32>
    %123 = tpu.matmul %122, %121, %cst_34 {dimension_numbers = #tpu.dot_dimension_numbers<[1], [0], [0], [1], [0, 0, 1, 1], [], []>} : vector<2x16xf32>, vector<16x32xf32>, vector<2x32xf32> -> vector<2x32xf32>
    %124 = arith.mulf %123, %123 : vector<2x32xf32>
    %cst_35 = arith.constant dense<0.000000e+00> : vector<2xf32>
    %125 = vector.multi_reduction <add>, %124, %cst_35 [1] : vector<2x32xf32> to vector<2xf32>
    %126 = vector.shape_cast %125 : vector<2xf32> to vector<2x1xf32>
    %127 = math.sqrt %126 : vector<2x1xf32>
    %cst_36 = arith.constant 9.99999996E-13 : f32
    %128 = vector.broadcast %cst_36 : f32 to vector<2x1xf32>
    %129 = arith.maximumf %127, %128 : vector<2x1xf32>
    %130 = vector.broadcast %129 : vector<2x1xf32> to vector<2x32xf32>
    %131 = arith.divf %123, %130 : vector<2x32xf32>
    %c0_37 = arith.constant 0 : index
    %c0_38 = arith.constant 0 : index
    %132 = vector.load %arg4[%c0_37, %c0_38] : memref<2x32xf32, #tpu.memory_space<vmem>>, vector<2x32xf32>
    tpu.vector_store %arg4[%c0_37, %c0_38], %131 {strides = array<i32>} : memref<2x32xf32, #tpu.memory_space<vmem>>, vector<2x32xf32>,
    return
  }
}

</mosaic_0001>

<bundles_post_ra>
// kernel: tpu_custom_call.1
= control target key start
LH: loop header
LB: loop body
LE: loop exit
PB: predicated region body
PF: predicated region fallthrough
CT: control target
= control target key end

     0   :  { %9 = vsyncpa [#allocation3], 0  ;;  %s1354_s0 = inlined_call_operand.vmem [shape: s32[16,1], index: 0, kind: input, shape index: {}]   ;;  %s1355_s1 = inlined_call_operand.hbm [shape: bf16[32,384], index: 1, kind: input, shape index: {}]   ;;  %s1356_s2 = inlined_call_operand.hbm [shape: bf16[256,128], index: 2, kind: input, shape index: {}]   ;;  %s1357_s3 = inlined_call_operand.hbm [shape: f32[56,128], index: 3, kind: input, shape index: {}]   ;;  %s1358_s4 = inlined_call_operand.hbm [shape: f32[2,32], index: 4, kind: output, shape index: {}]  }
   0x1   :  { %10 = vsyncpa [#allocation6], 0 }
   0x2   :  { %11 = vsyncpa [#allocation4], 0  ;;  %s1166_s15 = smov [#allocation5]   ;;  %s1072_s19 = scalar_lea.hbm %s1356_s2, 2048 }
   0x3   :  { %s31_s16 = sshll.u32 %s1166_s15, 4  ;;  %p1073_p0 = scmp.ne.s32.totalorder %s1356_s2, %s1072_s19  ;;  %s32_s16 = int_to_ptr.vmem [resolvable:$true] %s31_s16 }
   0x4   :  { %p1076_p1 = scmp.lt.u32.totalorder %s1072_s19, %s1356_s2 }
   0x6   :  { %p1078_p2 = pnand %p1076_p1, %p1073_p0 }
   0x8   :  { %1081 = shalt.err (!%p1078_p2)
}
   0x9   :  { %s1082_s24 = scalar_lea.vmem %s32_s16, 2048  ;;  %p1087_p4 = scmp.lt.s32.totalorder %s32_s16, %s32_s16 }
   0xa   :  { %p1083_p3 = scmp.ne.s32.totalorder %s32_s16, %s1082_s24  ;;  %p1088_p5 = scmp.lt.s32.totalorder %s1082_s24, %s1082_s24 }
   0xc   :  { %p1089_p6 = por %p1088_p5, %p1087_p4 }
   0xe   :  { %p1090_p7 = pnand %p1089_p6, %p1083_p3 }
  0x10   :  { %1093 = shalt.err (!%p1090_p7)
}
  0x11   :  { %s1167_s25 = smov 64   ;;  %s1168_s26 = smov 4  }
  0x12   :  { %37 = dma.hbm_to_vmem [thread:$0]  %s1356_s2, 2048, %s32_s16, [#allocation6], %s1167_s25, %s1167_s25, %s1168_s26  }
  0x13   :  { %s1169_s29 = smov [#allocation2]   ;;  %s1094_s7 = scalar_lea.hbm %s1355_s1, 768 }
  0x14   :  { %s19_s30 = sshll.u32 %s1169_s29, 4  ;;  %p1095_p8 = scmp.ne.s32.totalorder %s1355_s1, %s1094_s7  ;;  %s20_s30 = int_to_ptr.vmem [resolvable:$true] %s19_s30 }
  0x15   :  { %p1098_p9 = scmp.lt.u32.totalorder %s1094_s7, %s1355_s1 }
  0x17   :  { %p1100_p10 = pnand %p1098_p9, %p1095_p8 }
  0x19   :  { %1103 = shalt.err (!%p1100_p10)
}
  0x1a   :  { %s1104_s12 = scalar_lea.vmem %s20_s30, 768  ;;  %p1109_p12 = scmp.lt.s32.totalorder %s20_s30, %s20_s30 }
  0x1b   :  { %p1105_p11 = scmp.ne.s32.totalorder %s20_s30, %s1104_s12  ;;  %p1110_p13 = scmp.lt.s32.totalorder %s1104_s12, %s1104_s12 }
  0x1d   :  { %p1111_p0 = por %p1110_p13, %p1109_p12 }
  0x1f   :  { %p1112_p1 = pnand %p1111_p0, %p1105_p11 }
  0x21   :  { %1115 = shalt.err (!%p1112_p1)
}
  0x22   :  { %s1170_s2 = smov 192   ;;  %s1171_s13 = smov 12  }
  0x23   :  { %25 = dma.hbm_to_vmem [thread:$0]  %s1355_s1, 768, %s20_s30, [#allocation3], %s1170_s2, %s1170_s2, %s1171_s13  }
  0x24   :  { %s1172_s16 = smov [#allocation7]   ;;  %s1116_s20 = scalar_lea.hbm %s1357_s3, 896 }
  0x25   :  { %s43_s17 = sshll.u32 %s1172_s16, 4  ;;  %p1117_p2 = scmp.ne.s32.totalorder %s1357_s3, %s1116_s20  ;;  %s44_s17 = int_to_ptr.vmem [resolvable:$true] %s43_s17 }
  0x26   :  { %p1120_p3 = scmp.lt.u32.totalorder %s1116_s20, %s1357_s3 }
  0x28   :  { %p1122_p4 = pnand %p1120_p3, %p1117_p2 }
  0x2a   :  { %1125 = shalt.err (!%p1122_p4)
}
  0x2b   :  { %s1126_s25 = scalar_lea.vmem %s44_s17, 896  ;;  %p1131_p6 = scmp.lt.s32.totalorder %s44_s17, %s44_s17 }
  0x2c   :  { %p1127_p5 = scmp.ne.s32.totalorder %s44_s17, %s1126_s25  ;;  %p1132_p7 = scmp.lt.s32.totalorder %s1126_s25, %s1126_s25 }
  0x2e   :  { %p1133_p8 = por %p1132_p7, %p1131_p6 }
  0x30   :  { %p1134_p9 = pnand %p1133_p8, %p1127_p5 }
  0x32   :  { %1137 = shalt.err (!%p1134_p9)
}
  0x33   :  { %s1173_s1 = smov 128   ;;  %s1174_s26 = smov 8  }
  0x34   :  { %49 = dma.hbm_to_vmem [thread:$0]  %s1357_s3, 896, %s44_s17, [#allocation6], %s1173_s1, %s1173_s1, %s1174_s26  }
  0x35   :  { %1160 = dma.done.wait [#allocation3], 768  }
  0x36   :  { %1161 = vsyncadd [#allocation3], 4294966528 }
  0x37   :  { %1162 = dma.done.wait [#allocation6], 2944  }
  0x38   :  { %1163 = vsyncadd [#allocation6], 4294964352  ;;  %v1175_v0 = vmov 0   ;;  %v1176_v1 = vmov 0.0   ;;  %v60_v2 = vld [vmem:[%s1354_s0] sm:$0xff]  ;;  %v61_v4 = vld [vmem:[%s1354_s0 + $0x8] sm:$0xff]  ;;  %v69_v13 = vlaneseq }
  0x39   :  { %1023 = vset.pattern.permute.xlu0 %v1175_v0  ;;  %930 = vmatprep.subr.bf16.mxu0 %v1176_v1  ;;  %v1024_v3 = vld [vmem:[#allocation5] sm:$0xff]   ;;  %v1025_v5 = vld [vmem:[#allocation5 + $0x8] sm:$0xff]   ;;  %vm1177_vm0 = vmmov 0   ;;  %v1026_v6 = vld [vmem:[#allocation5 + $0x10] sm:$0xff]   ;;  %v1178_v17 = vmov 1.0|1.0  }
  0x3a   :  { %264 = vmatprep.mubr.bf16.mxu1 %v1175_v0  ;;  %72 = vperm.xlu0 %1023, %v60_v2   ;;  %v1027_v7 = vld [vmem:[#allocation5 + $0x18] sm:$0xff]   ;;  %v1032_v8 = vld [vmem:[#allocation2 + $0x4] ss:$12 sps:$4 sm:$0xff]   ;;  %v1029_v10 = vld [vmem:[#allocation5 + $0x28] sm:$0xff]   ;;  %v70_v15 = vand.u32 127, %v69_v13  ;;  %vm228_vm4 = vcmask 261120  }
  0x3b   :  { %931 = vmatpush3.bf16.msra.mxu0 %v1024_v3  ;;  %946 = vmatprep.mubr.msk.bf16.mxu0 %vm1177_vm0, %v1176_v1  ;;  %v1028_v9 = vld [vmem:[#allocation5 + $0x20] sm:$0xff]   ;;  %v1030_v11 = vld [vmem:[#allocation5 + $0x30] sm:$0xff]   ;;  %v1031_v12 = vld [vmem:[#allocation5 + $0x38] sm:$0xff]   ;;  %v1276_v32 = vshrl.u32 %v69_v13, 7  ;;  %vm383_vm5 = vcmask 130048   ;;  %vm678_vm6 = vcmask 523264  }
  0x3c   :  { %932 = vmatprep.subr.bf16.mxu0 %v1176_v1  ;;  %232 = vmatprep.subr.bf16.mxu1 %v1032_v8  ;;  %v1034_v18 = vld [vmem:[#allocation2] ss:$12 sps:$4 sm:$0xff]   ;;  %v1035_v19 = vld [vmem:[#allocation2 + $0x1c] ss:$12 sps:$4 sm:$0xff]   ;;  %v1037_v20 = vld [vmem:[#allocation2 + $0x18] ss:$12 sps:$4 sm:$0xff]  }
  0x3d   :  { %233 = vmatpush1.bf16.msra.mxu1 %v1034_v18  ;;  %v64_v21 = vld [vmem:[#allocation7 + $0x10] sm:$0xff]  ;;  %v65_v23 = vld [vmem:[#allocation7 + $0x18] sm:$0xff]  ;;  %v318_v33 = vsub.s32 0, %v1276_v32  ;;  %v1279_v34 = vld [vmem:[#allocation7] sm:$0xff]  ;;  %v324_v35 = vsub.s32 1, %v1276_v32  ;;  %v330_v44 = vsub.s32 2, %v1276_v32 }
  0x3e   :  { %75 = vperm.xlu0 %1023, %v61_v4   ;;  %234 = vmatprep.subr.bf16.mxu1 %v1035_v19  ;;  %v1038_v29 = vld [vmem:[#allocation2 + $0x8] ss:$12 sps:$4 sm:$0xff]   ;;  %v1039_v31 = vld [vmem:[#allocation2 + $0x20] ss:$12 sps:$4 sm:$0xff]   ;;  %v67_v58 = vld [vmem:[#allocation7 + $0x28] sm:$0xff]  ;;  %vm837_vm7 = vcmask 254976  }
  0x3f   :  { %933 = vmatpush3.bf16.msra.mxu0 %v1025_v5  ;;  %v319_v36 = vrot.slane %v1279_v34, %v318_v33  ;;  %v325_v38 = vrot.slane %v1279_v34, %v324_v35  ;;  %v331_v49 = vrot.slane %v1279_v34, %v330_v44  ;;  %v68_v60 = vld [vmem:[#allocation7 + $0x30] sm:$0xff]  ;;  %s1180_s0 = smov [#allocation8]  }
  0x40   :  { %934 = vmatprep.subr.bf16.mxu0 %v1176_v1  ;;  %s858_s3 = sshll.u32 %s1180_s0, 4  ;;  %s859_s3 = int_to_ptr.vmem [resolvable:$true] %s858_s3 }
  0x41   :  { %235 = vmatpush1.bf16.msra.mxu1 %v1037_v20  ;;  %s1138_s7 = scalar_lea.vmem %s859_s3, 32  ;;  %p1143_p11 = scmp.lt.s32.totalorder %s859_s3, %s859_s3 }
  0x42   :  { %950 = vmatprep.subr.bf16.mxu1 %v1176_v1  ;;  %p1139_p10 = scmp.ne.s32.totalorder %s859_s3, %s1138_s7  ;;  %p1144_p12 = scmp.lt.s32.totalorder %s1138_s7, %s1138_s7 }
  0x43   :  { %935 = vmatpush3.bf16.msra.mxu0 %v1026_v6 }
  0x44   :  { %936 = vmatprep.subr.bf16.mxu0 %v1176_v1  ;;  %p1145_p13 = por %p1144_p12, %p1143_p11 }
  0x46   :  { %p1146_p0 = pnand %p1145_p13, %p1139_p10 }
  0x47   :  { %937 = vmatpush3.bf16.msra.mxu0 %v1027_v7 }
  0x48   :  { %938 = vmatprep.subr.bf16.mxu0 %v1176_v1 }
  0x4b   :  { %939 = vmatpush3.bf16.msra.mxu0 %v1028_v9 }
  0x4c   :  { %940 = vmatprep.subr.bf16.mxu0 %v1176_v1 }
  0x4f   :  { %941 = vmatpush3.bf16.msra.mxu0 %v1029_v10 }
  0x50   :  { %942 = vmatprep.subr.bf16.mxu0 %v1176_v1 }
  0x53   :  { %943 = vmatpush3.bf16.msra.mxu0 %v1030_v11 }
  0x54   :  { %944 = vmatprep.subr.bf16.mxu0 %v1176_v1 }
  0x57   :  { %945 = vmatpush3.bf16.msra.mxu0 %v1031_v12 }
  0x58   :  { %986 = vmatprep.subr.bf16.mxu0 %v1176_v1 }
  0xb9   :  { %v73_v14 = vpop.permute.xlu0 %72 }
  0xba   :  { %vm77_vm1 = vcmp.eq.s32.totalorder %v70_v15, %v73_v14 }
  0xbd   :  { %v76_v16 = vpop.permute.xlu0 %75 }
  0xbe   :  { %vm78_vm2 = vcmp.eq.s32.totalorder %v70_v15, %v76_v16 }
  0xbf   :  { %vm876_vm3 = vmpackc.low %vm78_vm2, %vm77_vm1 }
  0xc0   :  { %947 = vmatmul.mubr.msk.bf16.vlgmr.msra.gmra.mrb[0].mxu0 %vm876_vm3, %v1178_v17 }
  0xc1   :  { %994 = vmatprep.mubr.msk.bf16.mxu0 %vm1177_vm0, %v1176_v1 }
 0x193   :  { %v180_v22 = vpop.f32.mrb[0].mxu0 }
 0x194   :  { %v948_v24 = vpop.f32.mrb[1].mxu0  ;;  %v1262_v26 = vadd.f32 %v180_v22, %v64_v21  ;;  %v1040_v21 = vld [vmem:[#allocation5 + $0x40] sm:$0xff]  }
 0x195   :  { %v183_v25 = vpop.f32.mrb[2].mxu0 }
 0x196   :  { %v1264_v27 = vadd.f32 %v183_v25, %v65_v23  ;;  %v949_v28 = vpop.f32.mrb[3].mxu0  ;;  %v1041_v23 = vld [vmem:[#allocation5 + $0x48] sm:$0xff]  }
 0x198   :  { %v187_v30 = vpack.c.bf16 %v1264_v27, %v1262_v26 }
 0x19a   :  { %884 = vmatmul.mubr.msk.bf16.vlgmr.msra.gmra.mrb[0].mxu1 %vm228_vm4, %v187_v30 }
 0x19b   :  { %951 = vmatpush3.bf16.msra.mxu1 %v1038_v29  ;;  %954 = vmatprep.mubr.msk.bf16.mxu1 %vm1177_vm0, %v1176_v1 }
 0x19c   :  { %952 = vmatprep.subr.bf16.mxu1 %v1176_v1 }
 0x19f   :  { %953 = vmatpush3.bf16.msra.mxu1 %v1039_v31  ;;  %v459_v31 = vsub.s32 3, %v1276_v32 }
 0x1a0   :  { %958 = vmatprep.subr.bf16.mxu1 %v1176_v1 }
 0x1a2   :  { %955 = vmatmul.mubr.msk.bf16.vlgmr.msra.gmra.mrb[4].mxu1 %vm228_vm4, %v187_v30 }
 0x1a3   :  { %960 = vmatprep.mubr.msk.bf16.mxu1 %vm1177_vm0, %v1176_v1 }
 0x26d   :  { %v266_v37 = vpop.f32.mrb[0].mxu1 }
 0x26e   :  { %v268_v39 = vpop.f32.mrb[1].mxu1  ;;  %v320_v41 = vadd.f32 %v319_v36, %v266_v37 }
 0x26f   :  { %v270_v40 = vpop.f32.mrb[2].mxu1  ;;  %v326_v45 = vadd.f32 %v325_v38, %v268_v39 }
 0x270   :  { %v321_v42 = vadd.f32 %v319_v36, %v270_v40  ;;  %v272_v43 = vpop.f32.mrb[3].mxu1  ;;  %v460_v36 = vrot.slane %v1279_v34, %v459_v31 }
 0x271   :  { %v327_v46 = vadd.f32 %v325_v38, %v272_v43 }
 0x272   :  { %v334_v47 = vpack.c.bf16 %v321_v42, %v320_v41 }
 0x273   :  { %v335_v48 = vpack.c.bf16 %v327_v46, %v326_v45 }
 0x275   :  { %v309_v50 = vpop.f32.mrb[4].mxu1  ;;  %v340_v51 = vsel %vm228_vm4, %v335_v48, 0 }
 0x276   :  { %v956_v52 = vpop.f32.mrb[5].mxu1  ;;  %959 = vmatpush3.bf16.xpose.msra.mxu1 %v340_v51  ;;  %v332_v54 = vadd.f32 %v331_v49, %v309_v50 }
 0x277   :  { %v312_v53 = vpop.f32.mrb[6].mxu1  ;;  %964 = vmatprep.subr.bf16.mxu1 %v1176_v1 }
 0x278   :  { %v333_v55 = vadd.f32 %v331_v49, %v312_v53  ;;  %v957_v56 = vpop.f32.mrb[7].mxu1 }
 0x279   :  { %v1042_v56 = vld [vmem:[#allocation5 + $0x50] sm:$0xff]  }
 0x27a   :  { %v407_v57 = vpack.c.bf16 %v333_v55, %v332_v54 }
 0x27d   :  { %961 = vmatmul.mubr.msk.bf16.vlgmr.msra.gmra.mrb[8].mxu1 %vm228_vm4, %v334_v47 }
 0x27e   :  { %965 = vmatpush3.bf16.msra.mxu1 %v407_v57  ;;  %966 = vmatprep.mubr.msk.bf16.mxu1 %vm1177_vm0, %v1176_v1 }
 0x27f   :  { %970 = vmatprep.subr.bf16.mxu1 %v1176_v1 }
 0x350   :  { %v376_v59 = vpop.f32.mrb[8].mxu1 }
 0x351   :  { %v377_v61 = vadd.f32 %v376_v59, %v67_v58  ;;  %v962_v62 = vpop.f32.mrb[9].mxu1 }
 0x352   :  { %v379_v63 = vpop.f32.mrb[10].mxu1 }
 0x353   :  { %v380_v0 = vadd.f32 %v379_v63, %v68_v60  ;;  %v963_v2 = vpop.f32.mrb[11].mxu1  ;;  %v384_v3 = vsel %vm383_vm5, %v377_v61, -inf  ;;  %v548_v63 = vsub.s32 4, %v1276_v32 }
 0x354   :  { %385 = vmax.xlane.f32.xlu1 %v384_v3 }
 0x355   :  { %v387_v4 = vsel %vm383_vm5, %v380_v0, -inf  ;;  %v549_v2 = vrot.slane %v1279_v34, %v548_v63 }
 0x358   :  { %388 = vmax.xlane.f32.xlu1 %v387_v4  ;;  %v554_v4 = vsub.s32 5, %v1276_v32 }
 0x3e1   :  { %v386_v5 = vpop.xlane.xlu1 %385 }
 0x3e2   :  { %v390_v6 = vsub.f32 %v377_v61, %v386_v5 }
 0x3e4   :  { %v392_v7 = vmul.f32 1.442695, %v390_v6 }
 0x3e5   :  { %v389_v8 = vpop.xlane.xlu1 %388 }
 0x3e6   :  { %1048 = vpow2.f32 %v392_v7  ;;  %v391_v9 = vsub.f32 %v380_v0, %v389_v8  ;;  %v555_v8 = vrot.slane %v1279_v34, %v554_v4 }
 0x3e8   :  { %v394_v10 = vmul.f32 1.442695, %v391_v9 }
 0x3ea   :  { %1050 = vpow2.f32 %v394_v10 }
 0x3f0   :  { %v1049_v11 = vpop.eup %1048 }
 0x3f1   :  { %v396_v12 = vsel %vm383_vm5, %v1049_v11, 0.0 }
 0x3f2   :  { %397 = vadd.xlane.f32.xlu0 %v396_v12 }
 0x3f4   :  { %v1051_v13 = vpop.eup %1050 }
 0x3f5   :  { %v399_v14 = vsel %vm383_vm5, %v1051_v13, 0.0 }
 0x3f6   :  { %400 = vadd.xlane.f32.xlu1 %v399_v14  ;;  %v1045_v14 = vld [vmem:[#allocation5 + $0x68] sm:$0xff]  }
 0x47f   :  { %v398_v15 = vpop.xlane.xlu0 %397 }
 0x480   :  { %1052 = vrcp.f32 %v398_v15  ;;  %v1046_v15 = vld [vmem:[#allocation5 + $0x70] sm:$0xff]  }
 0x483   :  { %v401_v16 = vpop.xlane.xlu1 %400 }
 0x484   :  { %1054 = vrcp.f32 %v401_v16  ;;  %v1047_v16 = vld [vmem:[#allocation5 + $0x78] sm:$0xff]  }
 0x48a   :  { %v1053_v17 = vpop.eup %1052 }
 0x48b   :  { %v403_v19 = vmul.f32 %v1053_v17, %v1049_v11  ;;  %v565_v17 = vsub.s32 6, %v1276_v32 }
 0x48e   :  { %v1055_v18 = vpop.eup %1054 }
 0x48f   :  { %v405_v20 = vmul.f32 %v1055_v18, %v1051_v13  ;;  %v1044_v13 = vld [vmem:[#allocation5 + $0x60] sm:$0xff]   ;;  %v566_v18 = vrot.slane %v1279_v34, %v565_v17 }
 0x490   :  { %987 = vmatpush3.bf16.msra.mxu0 %v1044_v13 }
 0x491   :  { %v406_v22 = vpack.c.bf16 %v405_v20, %v403_v19  ;;  %988 = vmatprep.subr.bf16.mxu0 %v1176_v1 }
 0x493   :  { %967 = vmatmul.mubr.msk.bf16.vlgmr.msra.gmra.mrb[12].mxu1 %vm383_vm5, %v406_v22 }
 0x494   :  { %971 = vmatpush3.bf16.msra.mxu1 %v1040_v21  ;;  %974 = vmatprep.mubr.msk.bf16.mxu1 %vm1177_vm0, %v1176_v1 }
 0x495   :  { %972 = vmatprep.subr.bf16.mxu1 %v1176_v1  ;;  %989 = vmatpush3.bf16.msra.mxu0 %v1045_v14 }
 0x496   :  { %990 = vmatprep.subr.bf16.mxu0 %v1176_v1 }
 0x498   :  { %973 = vmatpush3.bf16.msra.mxu1 %v1041_v23 }
 0x499   :  { %978 = vmatprep.subr.bf16.mxu1 %v1176_v1  ;;  %991 = vmatpush3.bf16.msra.mxu0 %v1046_v15 }
 0x49a   :  { %992 = vmatprep.subr.bf16.mxu0 %v1176_v1 }
 0x49d   :  { %993 = vmatpush3.bf16.msra.mxu0 %v1047_v16 }
 0x566   :  { %v445_v24 = vpop.f32.mrb[12].mxu1 }
 0x567   :  { %v968_v25 = vpop.f32.mrb[13].mxu1 }
 0x568   :  { %v448_v28 = vpop.f32.mrb[14].mxu1 }
 0x569   :  { %v452_v29 = vpack.c.bf16 %v448_v28, %v445_v24  ;;  %v969_v30 = vpop.f32.mrb[15].mxu1 }
 0x56b   :  { %975 = vmatmul.mubr.msk.bf16.vlgmr.msra.gmra.mrb[16].mxu1 %vm228_vm4, %v452_v29 }
 0x56c   :  { %982 = vmatprep.mubr.msk.bf16.mxu1 %vm1177_vm0, %v1176_v1  ;;  %979 = vmatpush3.bf16.msra.mxu1 %v1042_v56 }
 0x56d   :  { %980 = vmatprep.subr.bf16.mxu1 %v1176_v1 }
 0x63e   :  { %v510_v37 = vpop.f32.mrb[16].mxu1 }
 0x63f   :  { %v511_v38 = vadd.f32 %v510_v37, %v460_v36  ;;  %v976_v39 = vpop.f32.mrb[17].mxu1 }
 0x640   :  { %v513_v40 = vpop.f32.mrb[18].mxu1 }
 0x641   :  { %v514_v41 = vadd.f32 %v513_v40, %v460_v36  ;;  %v977_v42 = vpop.f32.mrb[19].mxu1  ;;  %v517_v43 = vadd.f32 %v511_v38, %v1262_v26 }
 0x643   :  { %v519_v44 = vsel %vm228_vm4, %v517_v43, 0.0  ;;  %v518_v45 = vadd.f32 %v514_v41, %v1264_v27  ;;  %v1043_v27 = vld [vmem:[#allocation5 + $0x58] sm:$0xff]  }
 0x644   :  { %520 = vadd.xlane.f32.xlu1 %v519_v44  ;;  %981 = vmatpush3.bf16.msra.mxu1 %v1043_v27 }
 0x645   :  { %v522_v46 = vsel %vm228_vm4, %v518_v45, 0.0 }
 0x648   :  { %523 = vadd.xlane.f32.xlu1 %v522_v46 }
 0x6d1   :  { %v521_v47 = vpop.xlane.xlu1 %520 }
 0x6d2   :  { %v526_v48 = vmul.f32 0.03125, %v521_v47 }
 0x6d4   :  { %v528_v49 = vsub.f32 %v517_v43, %v526_v48 }
 0x6d5   :  { %v524_v50 = vpop.xlane.xlu1 %523 }
 0x6d6   :  { %v527_v51 = vmul.f32 0.03125, %v524_v50  ;;  %v530_v52 = vmul.f32 %v528_v49, %v528_v49 }
 0x6d8   :  { %v529_v53 = vsub.f32 %v518_v45, %v527_v51  ;;  %v532_v54 = vsel %vm228_vm4, %v530_v52, 0.0 }
 0x6d9   :  { %533 = vadd.xlane.f32.xlu1 %v532_v54 }
 0x6da   :  { %v531_v55 = vmul.f32 %v529_v53, %v529_v53 }
 0x6dc   :  { %v535_v26 = vsel %vm228_vm4, %v531_v55, 0.0 }
 0x6dd   :  { %536 = vadd.xlane.f32.xlu1 %v535_v26 }
 0x766   :  { %v534_v57 = vpop.xlane.xlu1 %533 }
 0x767   :  { %v538_v58 = vmul.f32 0.03125, %v534_v57 }
 0x769   :  { %v540_v59 = vadd.f32 1e-05, %v538_v58 }
 0x76a   :  { %v537_v60 = vpop.xlane.xlu1 %536 }
 0x76b   :  { %1056 = vrsqrt.f32 %v540_v59  ;;  %v539_v61 = vmul.f32 0.03125, %v537_v60 }
 0x76d   :  { %v541_v62 = vadd.f32 1e-05, %v539_v61 }
 0x76f   :  { %1058 = vrsqrt.f32 %v541_v62 }
 0x775   :  { %v1057_v0 = vpop.eup %1056 }
 0x776   :  { %v544_v3 = vmul.f32 %v1057_v0, %v528_v49  ;;  %v652_v49 = vsub.s32 7, %v1276_v32 }
 0x778   :  { %v550_v6 = vmul.f32 %v549_v2, %v544_v3  ;;  %v653_v50 = vrot.slane %v1279_v34, %v652_v49 }
 0x779   :  { %v1059_v5 = vpop.eup %1058 }
 0x77a   :  { %v545_v7 = vmul.f32 %v1059_v5, %v529_v53  ;;  %v556_v10 = vadd.f32 %v555_v8, %v550_v6  ;;  %v1179_v5 = vmov 0.0|0.0  }
 0x77b   :  { %1005 = vmatprep.subr.bf16.mxu1 %v1179_v5 }
 0x77c   :  { %v551_v9 = vmul.f32 %v549_v2, %v545_v7 }
 0x77e   :  { %v557_v11 = vadd.f32 %v555_v8, %v551_v9 }
 0x780   :  { %v558_v12 = vpack.c.bf16 %v557_v11, %v556_v10 }
 0x782   :  { %983 = vmatmul.mubr.msk.bf16.vlgmr.msra.gmra.mrb[20].mxu1 %vm228_vm4, %v558_v12  ;;  %v63_v12 = vld [vmem:[#allocation7 + $0x8] sm:$0xff] }
 0x783   :  { %1002 = vmatprep.mubr.msk.f32.mxu1 %vm1177_vm0, %v1176_v1  ;;  %v754_v13 = vrot.slane %v63_v12, %v318_v33  ;;  %v760_v15 = vrot.slane %v63_v12, %v324_v35 }
 0x855   :  { %v616_v19 = vpop.f32.mrb[20].mxu1 }
 0x856   :  { %v617_v20 = vadd.f32 %v616_v19, %v566_v18  ;;  %v984_v21 = vpop.f32.mrb[21].mxu1 }
 0x857   :  { %v619_v22 = vpop.f32.mrb[22].mxu1 }
 0x858   :  { %v623_v23 = vmul.f32 %v617_v20, %v617_v20  ;;  %v620_v24 = vadd.f32 %v619_v22, %v566_v18  ;;  %v985_v25 = vpop.f32.mrb[23].mxu1 }
 0x85a   :  { %v625_v28 = vmul.f32 %v623_v23, %v617_v20  ;;  %v624_v29 = vmul.f32 %v620_v24, %v620_v24 }
 0x85c   :  { %v627_v30 = vmul.f32 0.044715, %v625_v28  ;;  %v626_v31 = vmul.f32 %v624_v29, %v620_v24 }
 0x85e   :  { %v629_v36 = vadd.f32 %v627_v30, %v617_v20  ;;  %v628_v37 = vmul.f32 0.044715, %v626_v31 }
 0x860   :  { %v631_v1 = vmul.f32 0.7978846, %v629_v36  ;;  %v630_v38 = vadd.f32 %v628_v37, %v620_v24 }
 0x862   :  { %1060 = vtanh.f32 %v631_v1  ;;  %v632_v39 = vmul.f32 0.7978846, %v630_v38 }
 0x864   :  { %1062 = vtanh.f32 %v632_v39 }
 0x86c   :  { %v1061_v40 = vpop.eup %1060 }
 0x86d   :  { %v635_v41 = vadd.f32 1.0, %v1061_v40 }
 0x86e   :  { %v1063_v42 = vpop.eup %1062 }
 0x86f   :  { %v637_v43 = vmul.f32 0.5, %v635_v41  ;;  %v636_v44 = vadd.f32 1.0, %v1063_v42 }
 0x871   :  { %v638_v45 = vmul.f32 0.5, %v636_v44  ;;  %v639_v46 = vmul.f32 %v637_v43, %v617_v20 }
 0x873   :  { %v640_v47 = vmul.f32 %v638_v45, %v620_v24  ;;  %v66_v24 = vld [vmem:[#allocation7 + $0x20] sm:$0xff] }
 0x875   :  { %v641_v48 = vpack.c.bf16 %v640_v47, %v639_v46 }
 0x877   :  { %995 = vmatmul.mubr.msk.bf16.vlgmr.msra.gmra.mrb[4].mxu0 %vm678_vm6, %v641_v48 }
 0x94a   :  { %v716_v51 = vpop.f32.mrb[4].mxu0 }
 0x94b   :  { %v717_v52 = vadd.f32 %v716_v51, %v653_v50  ;;  %v996_v53 = vpop.f32.mrb[5].mxu0 }
 0x94c   :  { %v719_v54 = vpop.f32.mrb[6].mxu0 }
 0x94d   :  { %v720_v55 = vadd.f32 %v719_v54, %v653_v50  ;;  %v997_v26 = vpop.f32.mrb[7].mxu0  ;;  %v723_v56 = vadd.f32 %v717_v52, %v556_v10 }
 0x94f   :  { %v725_v27 = vsel %vm228_vm4, %v723_v56, 0.0  ;;  %v724_v57 = vadd.f32 %v720_v55, %v557_v11 }
 0x950   :  { %726 = vadd.xlane.f32.xlu1 %v725_v27 }
 0x951   :  { %v728_v58 = vsel %vm228_vm4, %v724_v57, 0.0 }
 0x954   :  { %729 = vadd.xlane.f32.xlu1 %v728_v58 }
 0x9dd   :  { %v727_v59 = vpop.xlane.xlu1 %726 }
 0x9de   :  { %v731_v60 = vmul.f32 0.03125, %v727_v59 }
 0x9e0   :  { %v733_v61 = vsub.f32 %v723_v56, %v731_v60 }
 0x9e1   :  { %v730_v62 = vpop.xlane.xlu1 %729 }
 0x9e2   :  { %v732_v63 = vmul.f32 0.03125, %v730_v62  ;;  %v735_v34 = vmul.f32 %v733_v61, %v733_v61 }
 0x9e4   :  { %v734_v0 = vsub.f32 %v724_v57, %v732_v63  ;;  %v737_v2 = vsel %vm228_vm4, %v735_v34, 0.0 }
 0x9e5   :  { %738 = vadd.xlane.f32.xlu1 %v737_v2 }
 0x9e6   :  { %v736_v3 = vmul.f32 %v734_v0, %v734_v0 }
 0x9e8   :  { %v740_v4 = vsel %vm228_vm4, %v736_v3, 0.0 }
 0x9e9   :  { %741 = vadd.xlane.f32.xlu0 %v740_v4 }
 0xa72   :  { %v739_v6 = vpop.xlane.xlu1 %738 }
 0xa73   :  { %v743_v7 = vmul.f32 0.03125, %v739_v6 }
 0xa75   :  { %v745_v8 = vadd.f32 1e-05, %v743_v7 }
 0xa76   :  { %v742_v9 = vpop.xlane.xlu0 %741 }
 0xa77   :  { %1064 = vrsqrt.f32 %v745_v8  ;;  %v744_v10 = vmul.f32 0.03125, %v742_v9 }
 0xa79   :  { %v746_v11 = vadd.f32 1e-05, %v744_v10 }
 0xa7b   :  { %1066 = vrsqrt.f32 %v746_v11 }
 0xa81   :  { %v1065_v14 = vpop.eup %1064 }
 0xa82   :  { %v749_v16 = vmul.f32 %v1065_v14, %v733_v61 }
 0xa84   :  { %v755_v17 = vmul.f32 %v754_v13, %v749_v16 }
 0xa85   :  { %v1067_v18 = vpop.eup %1066 }
 0xa86   :  { %v750_v19 = vmul.f32 %v1067_v18, %v734_v0  ;;  %v761_v20 = vadd.f32 %v760_v15, %v755_v17 }
 0xa88   :  { %v756_v21 = vmul.f32 %v754_v13, %v750_v19 }
 0xa8a   :  { %v762_v22 = vadd.f32 %v760_v15, %v756_v21 }
 0xa8c   :  { %v1006_v23 = vpack.c.bf16 %v762_v22, %v761_v20 }
 0xa8e   :  { %1007 = vmatpush3.bf16.msra.mxu1 %v1006_v23 }
 0xa91   :  { %1003 = vmatmul.mubr.msk.f32.vlgmr.msra.gmra.mrb[24].mxu1 %vm383_vm5, %v66_v24 }
 0xb64   :  { %v832_v25 = vpop.f32.mrb[24].mxu1 }
 0xb65   :  { %v836_v28 = vmul.f32 %v832_v25, %v832_v25  ;;  %v1004_v33 = vpop.f32.mrb[25].mxu1 }
 0xb67   :  { %v838_v29 = vsel %vm837_vm7, %v836_v28, 0.0 }
 0xb68   :  { %839 = vadd.xlane.f32.xlu1 %v838_v29 }
 0xbf5   :  { %v840_v32 = vpop.xlane.xlu1 %839 }
 0xbf6   :  { %1068 = vrsqrt.f32 %v840_v32  ;;  %vm843_vm8 = vcmp.eq.f32.partialorder %v840_v32, inf  ;;  %v846_v31 = vand.u32 2147483648, %v840_v32  ;;  %vm845_vm9 = vcmp.eq.f32.partialorder %v840_v32, 0.0 }
 0xc00   :  { %v1069_v35 = vpop.eup %1068 }
 0xc01   :  { %v842_v30 = vmul.f32 %v1069_v35, %v840_v32 }
 0xc03   :  { %v844_v36 = vsel %vm843_vm8, %v840_v32, %v842_v30 }
 0xc04   :  { %v847_v37 = vsel %vm845_vm9, %v846_v31, %v844_v36 }
 0xc05   :  { %v848_v1 = vmax.f32 %v847_v37, 1e-12 }
 0xc07   :  { %1070 = vrcp.f32 %v848_v1 }
 0xc11   :  { %v1071_v38 = vpop.eup %1070 }
 0xc12   :  { %v850_v39 = vmul.f32 %v1071_v38, %v832_v25 }
 0xc14   :  { %851 = vst.msk [vmem:[#allocation8] sm:$0x3] %vm837_vm7, %v850_v39 }
 0xc15   :  { %1149 = shalt.err (!%p1146_p0)
}
 0xc16   :  { %s1150_s10 = scalar_lea.hbm %s1358_s4, 32 }
 0xc17   :  { %p1151_p1 = scmp.ne.s32.totalorder %s1358_s4, %s1150_s10  ;;  %p1154_p2 = scmp.lt.u32.totalorder %s1150_s10, %s1358_s4 }
 0xc19   :  { %p1156_p3 = pnand %p1154_p2, %p1151_p1 }
 0xc1b   :  { %1159 = shalt.err (!%p1156_p3)
}
 0xc1c   :  { %861 = dma.vmem_to_hbm [thread:$0]  %s859_s3, 32, %s1358_s4, [#allocation4]  }
 0xc1d   :  { %1164 = dma.done.wait [#allocation4], 32  }
 0xc1e   :  { %1165 = vsyncadd [#allocation4], 4294967264 }
 0xc1f   :  { %865 = vsyncpa [#allocation3], 1 }
 0xc20   :  { %866 = vsyncpa [#allocation6], 1 }
 0xc21   :  { %867 = vsyncpa [#allocation4], 1 }

</bundles_post_ra>
